<compile_context>
chip_gen: v5e
topology: v5e:2x2
jax: 0.10.0
libtpu: 0.0.40
codegen_flags: <defaults>
</compile_context>

<pallas_src>
import math

import jax
import jax.numpy as jnp
from jax.experimental import pallas as pl
from jax.experimental.pallas import tpu as pltpu


def _interp_matrix(out_size: int, in_size: int, scale: float) -> jnp.ndarray:
    """(out_size, in_size) bilinear interpolation matrix, PyTorch
    align_corners=False ('half pixel', scale_factor-provided) convention."""
    dst = jnp.arange(out_size, dtype=jnp.float32)
    src = (dst + 0.5) / scale - 0.5
    src = jnp.maximum(src, 0.0)  # PyTorch clamps negative source coords
    i0 = jnp.floor(src).astype(jnp.int32)
    i0 = jnp.minimum(i0, in_size - 1)
    i1 = jnp.minimum(i0 + 1, in_size - 1)
    lam = src - i0.astype(jnp.float32)
    w0 = jax.nn.one_hot(i0, in_size, dtype=jnp.float32) * (1.0 - lam)[:, None]
    w1 = jax.nn.one_hot(i1, in_size, dtype=jnp.float32) * lam[:, None]
    return w0 + w1  # rows sum to 1


def _bilinear_kernel(wh_ref, ww_ref, x_ref, o_ref):
    # wh_ref : (Hout, H)             H-interp matrix (shared across grid)
    # ww_ref : (cb*W, cb*Wout)       W-interp matrix (== (W, Wout) when cb==1)
    # x_ref  : (nb, H, cb*W)         nb plane-groups, cb channels on the lanes
    # o_ref  : (nb, Hout, cb*Wout)   lane-dense output slab
    nb, H, CW = x_ref.shape
    _, Hout, CWout = o_ref.shape

    x = x_ref[...]
    wh = wh_ref[...]
    ww = ww_ref[...]

    # --- H interpolation: batched matmul over the nb plane-groups ---
    wh_b = jnp.broadcast_to(wh, (nb, Hout, H))
    tmp = jax.lax.dot_general(
        wh_b, x,
        dimension_numbers=(((2,), (1,)), ((0,), (0,))),   # batch n, contract H
        preferred_element_type=jnp.float32)               # (nb, Hout, CW)
    tmp = tmp.astype(x.dtype)  # no-op for f32; single rounding for bf16

    # --- W interpolation: one flat MXU matmul with M = nb*Hout when cheap ---
    if Hout % 8 == 0:
        out = jnp.dot(tmp.reshape(nb * Hout, CW), ww,
                      preferred_element_type=jnp.float32)
        out = out.reshape(nb, Hout, CWout)
    else:
        ww_b = jnp.broadcast_to(ww, (nb, CW, CWout))
        out = jax.lax.dot_general(
            tmp, ww_b,
            dimension_numbers=(((2,), (1,)), ((0,), (0,))),
            preferred_element_type=jnp.float32)
    o_ref[...] = out.astype(o_ref.dtype)


def _num_tensorcores() -> int:
    """Best-effort TensorCore count per chip (megacore / v7x heuristics)."""
    try:
        kind = jax.devices()[0].device_kind.lower()
    except Exception:
        return 1
    return 2 if any(t in kind for t in ("v4", "v5p", "v7", "7x")) else 1


def interpolate_bilinear(x: jnp.ndarray, scale_factor: float) -> jnp.ndarray:
    """Pallas equivalent of F.interpolate(x, scale_factor=s, mode='bilinear',
    align_corners=False).  x is NCHW."""
    B, C, H, W = x.shape
    Hout = int(math.floor(H * scale_factor))
    Wout = int(math.floor(W * scale_factor))

    compute_dtype = jnp.bfloat16 if x.dtype == jnp.bfloat16 else jnp.float32
    itemsize = jnp.dtype(compute_dtype).itemsize
    out_itemsize = jnp.dtype(x.dtype).itemsize
    n_planes = B * C

    # ---- cb: channels fused into the lane axis (lane-dense MINIMUM only) ----
    if Wout >= 128:
        cb = 1  # natural layout already lane dense: no fusion, no transposes
    else:
        cb = -(-128 // Wout)                   # ceil(128 / Wout)
        for c in range(cb, 2 * cb + 1):        # small bump -> unmasked vst
            if (c * Wout) % 128 == 0:
                cb = c
                break

    n_groups = -(-n_planes // cb)

    # ---- nb: plane-groups per grid step (leading-axis blocking) ----
    group_in = cb * H * W * itemsize
    group_out = cb * Hout * Wout * out_itemsize
    weight_bytes = (Hout * H + (cb * W) * (cb * Wout)) * itemsize * 2  # dbl-buf
    n_tc = _num_tensorcores()
    vmem_budget = (24 << 20) if n_tc >= 2 else (48 << 20)
    vmem_limit = (32 << 20) if n_tc >= 2 else (64 << 20)

    nb = max(1, -(-(1 << 20) // group_in))     # target ~1 MiB of input / step
    nb_cap = max(1, (vmem_budget - weight_bytes) // (2 * (group_in + group_out)))
    nb = max(1, min(nb, nb_cap, n_groups))
    if n_tc >= 2 and n_groups >= 4:
        # >= 4 grid steps (>= 2 per TensorCore) so each core keeps pipelining.
        nb = min(nb, max(1, n_groups // 4))

    n_steps = -(-n_groups // nb)
    n_groups_pad = n_steps * nb
    planes_pad = n_groups_pad * cb

    # ---- wrapper-side layout plumbing ----
    x_flat = x.reshape(n_planes, H, W).astype(compute_dtype)
    if planes_pad != n_planes:
        x_flat = jnp.pad(x_flat, ((0, planes_pad - n_planes), (0, 0), (0, 0)))
    if cb == 1:
        x_blk = x_flat                                        # no extra copies
    else:
        x_blk = (x_flat.reshape(n_groups_pad, cb, H, W)
                 .transpose(0, 2, 1, 3)
                 .reshape(n_groups_pad, H, cb * W))

    wh = _interp_matrix(Hout, H, scale_factor).astype(compute_dtype)  # (Hout,H)
    wwt = _interp_matrix(Wout, W, scale_factor).T                     # (W,Wout)
    if cb == 1:
        wwk = wwt.astype(compute_dtype)
    else:
        wwk = jnp.kron(jnp.eye(cb, dtype=jnp.float32), wwt).astype(compute_dtype)

    flops = 2 * n_groups_pad * (Hout * H * (cb * W)
                                + Hout * (cb * W) * (cb * Wout))
    bytes_accessed = (planes_pad * H * W * itemsize
                      + planes_pad * Hout * Wout * out_itemsize
                      + (wh.size + wwk.size) * itemsize)

    out_blk = pl.pallas_call(
        _bilinear_kernel,
        out_shape=jax.ShapeDtypeStruct((n_groups_pad, Hout, cb * Wout), x.dtype),
        grid_spec=pltpu.PrefetchScalarGridSpec(
            num_scalar_prefetch=0,
            grid=(n_steps,),
            in_specs=[
                pl.BlockSpec((Hout, H), lambda i: (0, 0)),            # Wh
                pl.BlockSpec((cb * W, cb * Wout), lambda i: (0, 0)),  # Ww(/kron)
                pl.BlockSpec((nb, H, cb * W), lambda i: (i, 0, 0)),   # x slab
            ],
            out_specs=pl.BlockSpec((nb, Hout, cb * Wout), lambda i: (i, 0, 0)),
        ),
        compiler_params=pltpu.CompilerParams(
            dimension_semantics=("parallel",),
            vmem_limit_bytes=vmem_limit,
        ),
        cost_estimate=pl.CostEstimate(
            flops=int(flops),
            transcendentals=0,
            bytes_accessed=int(bytes_accessed),
        ),
    )(wh, wwk, x_blk)

    # ---- un-fuse channels from the lane axis (only when fusion was used) ----
    if cb == 1:
        out_flat = out_blk
    else:
        out_flat = (out_blk.reshape(n_groups_pad, Hout, cb, Wout)
                    .transpose(0, 2, 1, 3)
                    .reshape(planes_pad, Hout, Wout))
    return out_flat[:n_planes].reshape(B, C, Hout, Wout)


class InterpolatePallas:
    """Mirror of the PyTorch `Interpolate` module (bilinear mode)."""

    def __init__(self, mode: str, scale_factor: float):
        assert mode == "bilinear", "only bilinear mode implemented"
        # TODO(synk): 'nearest' / 'bicubic' modes not implemented.
        self.mode = mode
        self.scale_factor = scale_factor

    def __call__(self, x: jnp.ndarray) -> jnp.ndarray:
        return interpolate_bilinear(x, self.scale_factor)


if __name__ == "__main__":
    key = jax.random.PRNGKey(0)
    B, C, H, W = 2, 4, 16, 16
    scale_factor = 2.0
    x = jax.random.normal(key, (B, C, H, W), dtype=jnp.float32)

    model = InterpolatePallas(mode="bilinear", scale_factor=scale_factor)
    out = jax.block_until_ready(model(x))

    # Pure-JAX reference via the same separable interpolation matrices.
    Hout, Wout = int(H * scale_factor), int(W * scale_factor)
    wh = _interp_matrix(Hout, H, scale_factor)
    ww = _interp_matrix(Wout, W, scale_factor)
    ref = jnp.einsum("oh,bchw,pw->bcop", wh, x, ww,
                     precision=jax.lax.Precision.HIGHEST)

    assert out.shape == (B, C, Hout, Wout)
    assert jnp.allclose(out, ref, atol=1e-4, rtol=1e-4)

    print("KERNEL_OK")
</pallas_src>

<mosaic_0001>
module attributes {stable_mosaic.version = 11 : i64} {
  func.func @_bilinear_kernel(%arg0: i32, %arg1: memref<32x16xf32, #tpu.memory_space<vmem>>, %arg2: memref<64x128xf32, #tpu.memory_space<vmem>>, %arg3: memref<2x16x64xf32, #tpu.memory_space<vmem>>, %arg4: memref<2x32x128xf32, #tpu.memory_space<vmem>>) attributes {dimension_semantics = [#tpu.dimension_semantics<parallel>], iteration_bounds = array<i64: 1>, scalar_prefetch = 0 : i64, scratch_operands = 0 : i64, tpu.core_type = #tpu.core_type<tc>, window_params = [{pipeline_mode = #tpu.pipeline_mode<synchronous>, transform_indices = @transform_0, window_bounds = array<i64: 32, 16>}, {pipeline_mode = #tpu.pipeline_mode<synchronous>, transform_indices = @transform_1, window_bounds = array<i64: 64, 128>}, {transform_indices = @transform_2, window_bounds = array<i64: 2, 16, 64>}, {transform_indices = @transform_3, window_bounds = array<i64: 2, 32, 128>}]} {
    %c0 = arith.constant 0 : index
    %c0_0 = arith.constant 0 : index
    %c0_1 = arith.constant 0 : index
    %0 = vector.load %arg3[%c0, %c0_0, %c0_1] : memref<2x16x64xf32, #tpu.memory_space<vmem>>, vector<2x16x64xf32>
    %c0_2 = arith.constant 0 : index
    %c0_3 = arith.constant 0 : index
    %1 = vector.load %arg1[%c0_2, %c0_3] : memref<32x16xf32, #tpu.memory_space<vmem>>, vector<32x16xf32>
    %c0_4 = arith.constant 0 : index
    %c0_5 = arith.constant 0 : index
    %2 = vector.load %arg2[%c0_4, %c0_5] : memref<64x128xf32, #tpu.memory_space<vmem>>, vector<64x128xf32>
    %3 = vector.shape_cast %1 : vector<32x16xf32> to vector<1x32x16xf32>
    %4 = vector.broadcast %3 : vector<1x32x16xf32> to vector<2x32x16xf32>
    %cst = arith.constant dense<0.000000e+00> : vector<2x32x64xf32>
    %5 = tpu.matmul %4, %0, %cst {dimension_numbers = #tpu.dot_dimension_numbers<[2], [1], [1], [2], [0, 0, 0, 1, 1, 2], [0], [0]>} : vector<2x32x16xf32>, vector<2x16x64xf32>, vector<2x32x64xf32> -> vector<2x32x64xf32>
    %6 = vector.shape_cast %5 : vector<2x32x64xf32> to vector<64x64xf32>
    %cst_6 = arith.constant dense<0.000000e+00> : vector<64x128xf32>
    %7 = tpu.matmul %6, %2, %cst_6 {dimension_numbers = #tpu.dot_dimension_numbers<[1], [0], [0], [1], [0, 0, 1, 1], [], []>} : vector<64x64xf32>, vector<64x128xf32>, vector<64x128xf32> -> vector<64x128xf32>
    %8 = vector.shape_cast %7 : vector<64x128xf32> to vector<2x32x128xf32>
    %c0_7 = arith.constant 0 : index
    %c0_8 = arith.constant 0 : index
    %c0_9 = arith.constant 0 : index
    %9 = vector.load %arg4[%c0_7, %c0_8, %c0_9] : memref<2x32x128xf32, #tpu.memory_space<vmem>>, vector<2x32x128xf32>
    tpu.vector_store %arg4[%c0_7, %c0_8, %c0_9], %8 {strides = array<i32>} : memref<2x32x128xf32, #tpu.memory_space<vmem>>, vector<2x32x128xf32>,
    return
  }
  func.func @transform_0(%arg0: i32) -> (i32, i32) {
    %c0_i32 = arith.constant 0 : i32
    %c0_i32_0 = arith.constant 0 : i32
    %c0_i32_1 = arith.constant 0 : i32
    return %c0_i32, %c0_i32_0 : i32, i32
  }
  func.func @transform_1(%arg0: i32) -> (i32, i32) {
    %c0_i32 = arith.constant 0 : i32
    %c0_i32_0 = arith.constant 0 : i32
    %c0_i32_1 = arith.constant 0 : i32
    return %c0_i32, %c0_i32_0 : i32, i32
  }
  func.func @transform_2(%arg0: i32) -> (i32, i32, i32) {
    %c0_i32 = arith.constant 0 : i32
    %c0_i32_0 = arith.constant 0 : i32
    %c0_i32_1 = arith.constant 0 : i32
    return %arg0, %c0_i32, %c0_i32_0 : i32, i32, i32
  }
  func.func @transform_3(%arg0: i32) -> (i32, i32, i32) {
    %c0_i32 = arith.constant 0 : i32
    %c0_i32_0 = arith.constant 0 : i32
    %c0_i32_1 = arith.constant 0 : i32
    return %arg0, %c0_i32, %c0_i32_0 : i32, i32, i32
  }
}

</mosaic_0001>

<bundles_post_ra>
// kernel: tpu_custom_call.1
= control target key start
LH: loop header
LB: loop body
LE: loop exit
PB: predicated region body
PF: predicated region fallthrough
CT: control target
= control target key end

     0   :  { %8 = vsyncpa [#allocation3], 0  ;;  %s367_s0 = inlined_call_operand.vmem [shape: f32[32,16], index: 0, kind: input, shape index: {}]   ;;  %s368_s1 = inlined_call_operand.hbm [shape: f32[64,128], index: 1, kind: input, shape index: {}]   ;;  %s369_s2 = inlined_call_operand.vmem [shape: f32[2,16,64], index: 2, kind: input, shape index: {}]   ;;  %s370_s3 = inlined_call_operand.hbm [shape: f32[2,32,128], index: 3, kind: output, shape index: {}]  }
   0x1   :  { %9 = vsyncpa [#allocation4], 0  ;;  %s16_s14 = sshll.u32 %s368_s1, 4  ;;  %s291_s15 = smov [#allocation2]   ;;  %s17_s14 = int_to_ptr.hbm [resolvable:$true] %s16_s14 }
   0x2   :  { %s18_s16 = sshll.u32 %s291_s15, 4  ;;  %s292_s17 = smov 128   ;;  %s19_s16 = int_to_ptr.vmem [resolvable:$true] %s18_s16 }
   0x3   :  { %s293_s18 = smov 8  }
   0x4   :  { %24 = dma.hbm_to_vmem [thread:$0]  %s17_s14, 1024, %s19_s16, [#allocation3], %s292_s17, %s292_s17, %s293_s18  }
   0x5   :  { %287 = dma.done.wait [#allocation3], 1024  }
   0x6   :  { %288 = vsyncadd [#allocation3], 4294966272  ;;  %v32_v0 = vld [vmem:[%s369_s2 + $0x8] sm:$0xff]  ;;  %v34_v1 = vld [vmem:[%s369_s2 + $0x18] sm:$0xff]  ;;  %vm47_vm0 = vcmask 130048   ;;  %vm118_vm1 = vcmask 523264  }
   0x7   :  { %v31_v2 = vld [vmem:[%s369_s2] sm:$0xff]  ;;  %74 = vmatpush.msra.mxu0 %v32_v0  ;;  %103 = vmatpush.msra.mxu1 %v34_v1  ;;  %v33_v3 = vld [vmem:[%s369_s2 + $0x10] sm:$0xff]  ;;  %v46_v5 = vld [vmem:[#allocation2 + $0x38] sm:$0xff]  ;;  %s198_s9 = sshll.u32 %s370_s3, 4  ;;  %s199_s9 = int_to_ptr.hbm [resolvable:$true] %s198_s9 }
   0x8   :  { %v35_v4 = vld [vmem:[%s367_s0] sm:$0xff]  ;;  %v45_v6 = vld [vmem:[#allocation2 + $0x30] sm:$0xff]  ;;  %151 = vmatpush.msra.mxu2 %v46_v5  ;;  %227 = vmatpush.msra.mxu3 %v46_v5  ;;  %v44_v7 = vld [vmem:[#allocation2 + $0x28] sm:$0xff] }
   0x9   :  { %75 = vmatpush.msra.mxu0 %v31_v2  ;;  %104 = vmatpush.msra.mxu1 %v33_v3  ;;  %v43_v8 = vld [vmem:[#allocation2 + $0x20] sm:$0xff]  ;;  %v36_v9 = vld [vmem:[%s367_s0 + $0x8] sm:$0xff]  ;;  %v42_v10 = vld [vmem:[#allocation2 + $0x18] sm:$0xff] }
   0xa   :  { %211 = vmatmul.msk.f32.vlgmr.msra.gmra.mxu0 %vm47_vm0, %v35_v4  ;;  %215 = vmatmul.msk.f32.vlgmr.msra.gmra.mxu1 %vm47_vm0, %v35_v4  ;;  %v41_v11 = vld [vmem:[#allocation2 + $0x10] sm:$0xff]  ;;  %v40_v12 = vld [vmem:[#allocation2 + $0x8] sm:$0xff]  ;;  %v38_v14 = vld [vmem:[%s367_s0 + $0x18] sm:$0xff] }
   0xb   :  { %152 = vmatpush.msra.mxu2 %v45_v6  ;;  %228 = vmatpush.msra.mxu3 %v45_v6  ;;  %v37_v13 = vld [vmem:[%s367_s0 + $0x10] sm:$0xff]  ;;  %v39_v15 = vld [vmem:[#allocation2] sm:$0xff]  ;;  %s294_s0 = smov [#allocation5]  }
   0xc   :  { %s196_s6 = sshll.u32 %s294_s0, 4  ;;  %s197_s6 = int_to_ptr.vmem [resolvable:$true] %s196_s6 }
   0xd   :  { %153 = vmatpush.msra.mxu2 %v44_v7  ;;  %229 = vmatpush.msra.mxu3 %v44_v7 }
   0xf   :  { %154 = vmatpush.msra.mxu2 %v43_v8  ;;  %230 = vmatpush.msra.mxu3 %v43_v8 }
  0x11   :  { %155 = vmatpush.msra.mxu2 %v42_v10  ;;  %231 = vmatpush.msra.mxu3 %v42_v10 }
  0x12   :  { %212 = vmatmul.msk.f32.gmra.mxu0 %vm47_vm0, %v36_v9  ;;  %216 = vmatmul.msk.f32.gmra.mxu1 %vm47_vm0, %v36_v9 }
  0x13   :  { %156 = vmatpush.msra.mxu2 %v41_v11  ;;  %232 = vmatpush.msra.mxu3 %v41_v11 }
  0x15   :  { %157 = vmatpush.msra.mxu2 %v40_v12  ;;  %233 = vmatpush.msra.mxu3 %v40_v12 }
  0x17   :  { %158 = vmatpush.msra.mxu2 %v39_v15  ;;  %234 = vmatpush.msra.mxu3 %v39_v15 }
  0x1a   :  { %213 = vmatmul.msk.f32.gmra.mxu0 %vm47_vm0, %v37_v13  ;;  %217 = vmatmul.msk.f32.gmra.mxu1 %vm47_vm0, %v37_v13 }
  0x22   :  { %214 = vmatmul.msk.f32.gmra.mxu0 %vm47_vm0, %v38_v14  ;;  %218 = vmatmul.msk.f32.gmra.mxu1 %vm47_vm0, %v38_v14 }
  0x87   :  { %v77_v16 = vpop.f32.mrf.mxu0  ;;  %v106_v17 = vpop.f32.mrf.mxu1 }
  0x88   :  { %219 = vmatmul.msk.f32.vlgmr.msra.gmra.mxu2 %vm118_vm1, %v77_v16  ;;  %223 = vmatmul.msk.f32.vlgmr.msra.gmra.mxu3 %vm118_vm1, %v106_v17 }
  0x8f   :  { %v80_v18 = vpop.f32.mrf.mxu0  ;;  %v109_v19 = vpop.f32.mrf.mxu1 }
  0x90   :  { %220 = vmatmul.msk.f32.gmra.mxu2 %vm118_vm1, %v80_v18  ;;  %224 = vmatmul.msk.f32.gmra.mxu3 %vm118_vm1, %v109_v19 }
  0x97   :  { %v83_v20 = vpop.f32.mrf.mxu0  ;;  %v112_v21 = vpop.f32.mrf.mxu1 }
  0x98   :  { %221 = vmatmul.msk.f32.gmra.mxu2 %vm118_vm1, %v83_v20  ;;  %225 = vmatmul.msk.f32.gmra.mxu3 %vm118_vm1, %v112_v21 }
  0x9f   :  { %v86_v22 = vpop.f32.mrf.mxu0  ;;  %v115_v23 = vpop.f32.mrf.mxu1 }
  0xa0   :  { %222 = vmatmul.msk.f32.gmra.mxu2 %vm118_vm1, %v86_v22  ;;  %226 = vmatmul.msk.f32.gmra.mxu3 %vm118_vm1, %v115_v23 }
 0x10b   :  { %v160_v24 = vpop.f32.mrf.mxu2  ;;  %v172_v25 = vpop.f32.mrf.mxu3 }
 0x10c   :  { %184 = vst [vmem:[#allocation5] sm:$0xff] %v160_v24 }
 0x10d   :  { %188 = vst [vmem:[#allocation5 + $0x20] sm:$0xff] %v172_v25 }
 0x113   :  { %v163_v26 = vpop.f32.mrf.mxu2  ;;  %v175_v27 = vpop.f32.mrf.mxu3 }
 0x114   :  { %185 = vst [vmem:[#allocation5 + $0x8] sm:$0xff] %v163_v26 }
 0x115   :  { %189 = vst [vmem:[#allocation5 + $0x28] sm:$0xff] %v175_v27 }
 0x11b   :  { %v166_v28 = vpop.f32.mrf.mxu2  ;;  %v178_v29 = vpop.f32.mrf.mxu3 }
 0x11c   :  { %186 = vst [vmem:[#allocation5 + $0x10] sm:$0xff] %v166_v28 }
 0x11d   :  { %190 = vst [vmem:[#allocation5 + $0x30] sm:$0xff] %v178_v29 }
 0x123   :  { %v169_v30 = vpop.f32.mrf.mxu2  ;;  %v181_v31 = vpop.f32.mrf.mxu3 }
 0x124   :  { %187 = vst [vmem:[#allocation5 + $0x18] sm:$0xff] %v169_v30 }
 0x125   :  { %191 = vst [vmem:[#allocation5 + $0x38] sm:$0xff] %v181_v31 }
 0x126   :  { %204 = dma.vmem_to_hbm [thread:$0]  %s197_s6, 1024, %s199_s9, [#allocation4], %s292_s17, %s292_s17, %s293_s18  }
 0x127   :  { %289 = dma.done.wait [#allocation4], 1024  }
 0x128   :  { %290 = vsyncadd [#allocation4], 4294966272 }
 0x129   :  { %209 = vsyncpa [#allocation3], 1 }
 0x12a   :  { %210 = vsyncpa [#allocation4], 1 }

</bundles_post_ra>
